<compile_context>
chip_gen: v7x
topology: tpu7x:2x2x1
jax: 0.10.0
libtpu: 0.0.40
codegen_flags: <defaults>
</compile_context>

<pallas_src>
import math

import jax
import jax.numpy as jnp
from jax.experimental import pallas as pl
from jax.experimental.pallas import tpu as pltpu

BATCH = 2
SEQ = 16          # x sequence length (<= MAX_SEQ_LEN)
D_MODEL = 32
MAX_SEQ_LEN = 64  # seq_len passed to the module (length of the pe buffer)
DROPOUT_P = 0.1   # unused at inference

# x + pe + out resident in VMEM up to this many bytes; above it, go gridded.
_VMEM_RESIDENT_BUDGET = 8 * 1024 * 1024   # well under v7x's 32 MiB scoped default
_GRID_BLOCK_ROWS = 1024                   # (1024,128) f32 = 512 KiB per operand block


# --------------------------------- kernel ------------------------------------

def add_pe_kernel(x_ref, pe_ref, out_ref):
    # Pure load-add-store on lane-dense (rows, 128) tiles.
    out_ref[...] = x_ref[...] + pe_ref[...]


def _lane_dense_add(x2d: jnp.ndarray, pe2d: jnp.ndarray) -> jnp.ndarray:
    """Elementwise add of two (rows, 128) lane-dense f32 slabs via Pallas."""
    rows, lanes = x2d.shape
    total_bytes = 3 * rows * lanes * x2d.dtype.itemsize  # x + pe + out

    if total_bytes <= _VMEM_RESIDENT_BUDGET:
        # Small: single invocation, everything resident in VMEM, no grid overhead.
        spec = pl.BlockSpec(memory_space=pltpu.MemorySpace.VMEM)
        return pl.pallas_call(
            add_pe_kernel,
            out_shape=jax.ShapeDtypeStruct(x2d.shape, x2d.dtype),
            in_specs=[spec, spec],
            out_specs=spec,
            input_output_aliases={0: 0},   # output reuses x's HBM buffer
        )(x2d, pe2d)

    # Large: 1-D grid over flattened rows, lane-dense blocks, 2-TC parallel on v7x.
    spec = pl.BlockSpec((_GRID_BLOCK_ROWS, lanes), lambda i: (i, 0))
    return pl.pallas_call(
        add_pe_kernel,
        out_shape=jax.ShapeDtypeStruct(x2d.shape, x2d.dtype),
        grid=(pl.cdiv(rows, _GRID_BLOCK_ROWS),),
        in_specs=[spec, spec],
        out_specs=spec,
        input_output_aliases={0: 0},
        compiler_params=pltpu.CompilerParams(dimension_semantics=("parallel",)),
    )(x2d, pe2d)


# --------------------------------- wrapper -----------------------------------

def make_pe(seq_len: int, d_model: int) -> jnp.ndarray:
    """Builds the positional-encoding buffer exactly as the PyTorch __init__ does."""
    position = jnp.arange(seq_len, dtype=jnp.float32)[:, None]            # (S, 1)
    div_term = jnp.exp(
        jnp.arange(0, d_model, 2, dtype=jnp.float32) * (math.log(10000.0) / d_model)
    )                                                                     # (D/2,)
    ang = position * div_term                                             # (S, D/2)
    pe = jnp.zeros((seq_len, d_model), jnp.float32)
    pe = pe.at[:, 0::2].set(jnp.sin(ang))
    pe = pe.at[:, 1::2].set(jnp.cos(ang))
    return pe


def positional_encoding(x: jnp.ndarray, pe_buffer: jnp.ndarray) -> jnp.ndarray:
    """x: (B, S, D) float32; pe_buffer: (MAX_SEq_LEN, D) float32."""
    b, s, d = x.shape
    # pe is a 2 KiB constant; broadcasting it over batch in the wrapper keeps the
    # kernel body to exactly one vadd (no in-kernel broadcast / tiling work).
    pe = jnp.broadcast_to(pe_buffer[None, :s, :], (b, s, d))

    n = b * s * d
    if n % 128 == 0:
        # Lane-dense: batch folded into sublanes -> (B*S*D/128, 128); for the
        # test shape this is exactly one dense (8,128) vreg tile.
        rows = n // 128
        out = _lane_dense_add(x.reshape(rows, 128), pe.reshape(rows, 128))
        return out.reshape(b, s, d)

    # Fallback: fold batch as (B*S, D) and pad the lane dim up to 128 so stores
    # remain full unmasked 128-lane vst (no vst.msk partials); slice after.
    rows = b * s
    pad = (-d) % 128
    x_in = jnp.pad(x.reshape(rows, d), ((0, 0), (0, pad)))
    pe_in = jnp.pad(pe.reshape(rows, d), ((0, 0), (0, pad)))
    out = _lane_dense_add(x_in, pe_in)
    return out[:, :d].reshape(b, s, d)


# ----------------------------- pure-JAX reference ----------------------------

def positional_encoding_ref(x, pe_buffer):
    return x + pe_buffer[None, : x.shape[1], :]


# ----------------------------------- main -------------------------------------

if __name__ == "__main__":
    key = jax.random.PRNGKey(0)
    x = jax.random.normal(key, (BATCH, SEQ, D_MODEL), jnp.float32)
    pe_buffer = make_pe(MAX_SEQ_LEN, D_MODEL)

    out = positional_encoding(x, pe_buffer)
    out = jax.block_until_ready(out)

    ref = positional_encoding_ref(x, pe_buffer)
    err = float(jnp.max(jnp.abs(out - ref)))
    assert out.shape == (BATCH, SEQ, D_MODEL)
    assert err < 1e-6, f"max abs err {err}"
    print("KERNEL_OK")
</pallas_src>

<mosaic_0001>
module attributes {stable_mosaic.version = 11 : i64} {
  func.func @add_pe_kernel(%arg0: memref<8x128xf32, #tpu.memory_space<vmem>>, %arg1: memref<8x128xf32, #tpu.memory_space<vmem>>, %arg2: memref<8x128xf32, #tpu.memory_space<vmem>>) attributes {dimension_semantics = [], scalar_prefetch = 0 : i64, scratch_operands = 0 : i64, tpu.core_type = #tpu.core_type<tc>} {
    %c0 = arith.constant 0 : index
    %c0_0 = arith.constant 0 : index
    %0 = vector.load %arg0[%c0, %c0_0] : memref<8x128xf32, #tpu.memory_space<vmem>>, vector<8x128xf32>
    %c0_1 = arith.constant 0 : index
    %c0_2 = arith.constant 0 : index
    %1 = vector.load %arg1[%c0_1, %c0_2] : memref<8x128xf32, #tpu.memory_space<vmem>>, vector<8x128xf32>
    %2 = arith.addf %0, %1 : vector<8x128xf32>
    %c0_3 = arith.constant 0 : index
    %c0_4 = arith.constant 0 : index
    %3 = vector.load %arg2[%c0_3, %c0_4] : memref<8x128xf32, #tpu.memory_space<vmem>>, vector<8x128xf32>
    tpu.vector_store %arg2[%c0_3, %c0_4], %2 {strides = array<i32>} : memref<8x128xf32, #tpu.memory_space<vmem>>, vector<8x128xf32>,
    return
  }
}

</mosaic_0001>

<bundles_post_ra>
// kernel: tpu_custom_call.1
= control target key start
LH: loop header
LB: loop body
LE: loop exit
PB: predicated region body
PF: predicated region fallthrough
CT: control target
= control target key end

     0   :  { %7 = vsyncpa [#allocation3], 0  ;;  %s137_s0 = inlined_call_operand.hbm [shape: f32[8,128], index: 0, kind: input, shape index: {}, may-alias: {0,2}]   ;;  %s138_s1 = inlined_call_operand.vmem [shape: f32[8,128], index: 1, kind: input, shape index: {}]   ;;  %s139_s2 = inlined_call_operand.hbm [shape: f32[8,128], index: 2, kind: output, shape index: {}, may-alias: {0,2}]  }
   0x1   :  { %8 = vsyncpa [#allocation4], 0  ;;  %s93_s9 = smov [#allocation2]   ;;  %s45_s13 = scalar_lea.hbm %s137_s0, 128 }
   0x2   :  { %s15_s10 = sshll.u32 %s93_s9, 4  ;;  %p46_p0 = scmp.ne.s32.totalorder %s137_s0, %s45_s13  ;;  %s16_s10 = int_to_ptr.vmem [resolvable:$true] %s15_s10 }
   0x3   :  { %p49_p1 = scmp.lt.u32.totalorder %s45_s13, %s137_s0 }
   0x5   :  { %p51_p2 = pnand %p49_p1, %p46_p0 }
   0x7   :  { %54 = shalt.err (!%p51_p2)
}
   0x8   :  { %s55_s18 = scalar_lea.vmem %s16_s10, 128  ;;  %p60_p4 = scmp.lt.s32.totalorder %s16_s10, %s16_s10 }
   0x9   :  { %p56_p3 = scmp.ne.s32.totalorder %s16_s10, %s55_s18  ;;  %p61_p5 = scmp.lt.s32.totalorder %s55_s18, %s55_s18 }
   0xb   :  { %p62_p6 = por %p61_p5, %p60_p4 }
   0xd   :  { %p63_p7 = pnand %p62_p6, %p56_p3 }
   0xf   :  { %66 = shalt.err (!%p63_p7)
}
  0x10   :  { %18 = dma.hbm_to_vmem [thread:$0]  %s137_s0, 128, %s16_s10, [#allocation3]  }
  0x11   :  { %89 = dma.done.wait [#allocation3], 128  }
  0x12   :  { %90 = vsyncadd [#allocation3], 4294967168  ;;  %s94_s21 = smov [#allocation5]   ;;  %v24_v0 = vld [vmem:[#allocation2] sm:$0xff] }
  0x13   :  { %s34_s22 = sshll.u32 %s94_s21, 4  ;;  %v25_v1 = vld [vmem:[%s138_s1] sm:$0xff]  ;;  %s35_s22 = int_to_ptr.vmem [resolvable:$true] %s34_s22 }
  0x14   :  { %v26_v2 = vadd.f32 %v25_v1, %v24_v0  ;;  %s67_s25 = scalar_lea.vmem %s35_s22, 128  ;;  %p72_p9 = scmp.lt.s32.totalorder %s35_s22, %s35_s22 }
  0x15   :  { %p68_p8 = scmp.ne.s32.totalorder %s35_s22, %s67_s25  ;;  %p73_p10 = scmp.lt.s32.totalorder %s67_s25, %s67_s25 }
  0x16   :  { %27 = vst [vmem:[#allocation5] sm:$0xff] %v26_v2 }
  0x17   :  { %p74_p11 = por %p73_p10, %p72_p9 }
  0x19   :  { %p75_p12 = pnand %p74_p11, %p68_p8 }
  0x1b   :  { %78 = shalt.err (!%p75_p12)
}
  0x1c   :  { %s79_s27 = scalar_lea.hbm %s139_s2, 128 }
  0x1d   :  { %p80_p13 = scmp.ne.s32.totalorder %s139_s2, %s79_s27  ;;  %p83_p0 = scmp.lt.u32.totalorder %s79_s27, %s139_s2 }
  0x1f   :  { %p85_p1 = pnand %p83_p0, %p80_p13 }
  0x21   :  { %88 = shalt.err (!%p85_p1)
}
  0x22   :  { %37 = dma.vmem_to_hbm [thread:$0]  %s35_s22, 128, %s139_s2, [#allocation4]  }
  0x23   :  { %91 = dma.done.wait [#allocation4], 128  }
  0x24   :  { %92 = vsyncadd [#allocation4], 4294967168 }
  0x25   :  { %41 = vsyncpa [#allocation3], 1 }
  0x26   :  { %42 = vsyncpa [#allocation4], 1 }

</bundles_post_ra>
